<compile_context>
chip_gen: v5e
topology: v5e:2x2
jax: 0.10.0
libtpu: 0.0.40
codegen_flags: <defaults>
</compile_context>

<pallas_src>
import jax
import jax.numpy as jnp
from jax.experimental import pallas as pl
from jax.experimental.pallas import tpu as pltpu

EPSILON = 1e-4        # matches DropNorm.__init__ default
MU_COEFF = 0.9        # mu_avg_coeff
SIGMA2_COEFF = 0.9    # sigma2_avg_coeff
_LANE = 128
_MIB = 1024 * 1024


def _dropnorm_kernel(x_ref, mask_ref, gamma_ref, beta_ref, mu_avg_ref, s2_avg_ref,
                     y_ref, mu_out_ref, s2_out_ref):
    """Training-mode forward of DropNorm on one (B, TILE_F) feature tile.

    x_ref        : (B, TILE_F)  input activations (native dtype)
    mask_ref     : (1, TILE_F)  1.0 = active neuron, 0.0 = dropped (f32)
    gamma/beta   : (1, TILE_F)  learned affine parameters (f32)
    mu_avg/s2_avg: (1, TILE_F)  running mean / variance (updated where masked)
    y_ref        : (B, TILE_F)  output (same dtype as x)
    mu_out/s2_out: (1, TILE_F)  updated running statistics (aliased to inputs)
    """
    x = x_ref[...].astype(jnp.float32)            # (B, T) f32 working copy
    m = mask_ref[...]                             # (1, T) f32 in {0, 1}

    b = x.shape[0]
    inv_b = 1.0 / b
    inv_bm1 = 1.0 / max(b - 1, 1)                 # B==1 guard (torch's unbiased var would NaN)

    # per-feature batch statistics (torch.var_mean(sub_x, dim=0): unbiased var)
    mu = jnp.sum(x, axis=0, keepdims=True) * inv_b            # (1, T)
    diff = x - mu                                             # (B, T)
    sigma2 = jnp.sum(diff * diff, axis=0, keepdims=True) * inv_bm1

    inv_std = jax.lax.rsqrt(sigma2 + EPSILON)

    # Fold every per-feature factor into a single per-element FMA:
    #   active lane : y = gamma * (x - mu) * inv_std + beta
    #   dropped lane: y = beta          (x_hat == 0 in the reference module)
    scale = (m * gamma_ref[...]) * inv_std                    # (1, T)
    shift = beta_ref[...] - scale * mu                        # (1, T)
    y_ref[...] = (x * scale + shift).astype(y_ref.dtype)

    # running-average updates only at masked (active) positions:
    #   new = avg + mask * (1 - coeff) * (stat - avg)
    mu_out_ref[...] = mu_avg_ref[...] + m * ((1.0 - MU_COEFF) * (mu - mu_avg_ref[...]))
    s2_out_ref[...] = s2_avg_ref[...] + m * ((1.0 - SIGMA2_COEFF) * (sigma2 - s2_avg_ref[...]))


def _device_kind():
    try:
        return jax.devices()[0].device_kind.lower()
    except Exception:
        return ""


def _vmem_budget(kind):
    """(per-step working-set budget, scoped-VMEM limit to request) in bytes."""
    if "v5 lite" in kind or "v5e" in kind or "v5lite" in kind:
        return 12 * _MIB, 32 * _MIB      # 16 MiB default scoped / 128 MiB physical
    if "v6" in kind:
        return 40 * _MIB, 72 * _MIB      # 32 MiB default scoped / 128 MiB physical
    if "v7" in kind:
        return 26 * _MIB, 48 * _MIB      # only 64 MiB physical per TC — keep headroom
    return 16 * _MIB, 32 * _MIB          # conservative fallback (v4/v5p/unknown)


def _per_lane_bytes(batch, x_bytes):
    """Bytes of per-grid-step VMEM working set per 128-lane feature column."""
    # x & y blocks, double-buffered ............ 2 * 2 * B * x_bytes
    # in-kernel f32 intermediates (x, diff) .... 2 * B * 4
    # (1,T) f32 vectors: 5 in + 2 out, double-buffered, padded to 8 sublanes,
    # plus ~8 (1,T) f32 temporaries ............ (14 + 8) * 8 * 4
    return 4 * batch * x_bytes + 8 * batch + 22 * 32


def _pick_tile_f(batch, f, x_bytes, kind, budget, tile_f=None):
    """Lane-dense feature tile sized by the VMEM budget (no artificial cap)."""
    if f <= _LANE:
        return int(f)                            # single full-width block
    f_floor = (f // _LANE) * _LANE               # widest lane-aligned tile that
                                                 # never starts past the array end
    if tile_f is not None:
        return int(max(_LANE, (min(tile_f, f_floor) // _LANE) * _LANE))

    per_col = _per_lane_bytes(batch, x_bytes)
    t = (budget // per_col) // _LANE * _LANE
    t = max(_LANE, min(t, f_floor))

    # v7x: 2 TensorCores shard the "parallel" feature axis — guarantee >= 2
    # tiles as long as each half keeps >= 512 lanes.
    if "v7" in kind and f >= 2 * 512:
        half = -(-f // 2)
        half = (-(-half // _LANE)) * _LANE       # ceil(F/2) rounded up to 128
        t = min(t, max(512, half))
    return int(t)


def dropnorm_forward(x, mask, gamma, beta, mu_avg, sigma2_avg, *, tile_f=None):
    """Returns (y, new_mu_avg, new_sigma2_avg) — training-mode DropNorm forward."""
    batch = x.shape[0]
    feat_shape = x.shape[1:]
    f = 1
    for d in feat_shape:
        f *= d

    out_dtype = x.dtype
    x_bytes = jnp.dtype(out_dtype).itemsize

    kind = _device_kind()
    budget, vmem_limit = _vmem_budget(kind)
    tile = _pick_tile_f(batch, f, x_bytes, kind, budget, tile_f)
    n_tiles = pl.cdiv(f, tile)

    # Make sure the requested scoped-VMEM limit covers the actual working set
    # (matters only when the minimum 128-lane tile is already large, i.e. huge B).
    need = _per_lane_bytes(batch, x_bytes) * (-(-tile // _LANE)) + 2 * _MIB
    vmem_limit = max(vmem_limit, need)
    vmem_limit = min(vmem_limit, 56 * _MIB if "v7" in kind else 120 * _MIB)
    # TODO(synk): very large batches would need a second (batch-chunked) grid axis
    # with sum/sumsq accumulation in scratch; not needed at these shapes.

    # Flattened views only — no jnp.pad of x and no output slice (ragged last
    # feature tile is handled by the pipeline's bounds masking; feature columns
    # are independent, so don't-care lanes never pollute valid statistics).
    x2 = x.reshape(batch, f)
    mask2 = mask.reshape(1, f).astype(jnp.float32)
    gamma2 = gamma.reshape(1, f).astype(jnp.float32)
    beta2 = beta.reshape(1, f).astype(jnp.float32)
    mu2 = mu_avg.reshape(1, f).astype(jnp.float32)
    s22 = sigma2_avg.reshape(1, f).astype(jnp.float32)

    x_spec = pl.BlockSpec((batch, tile), lambda j: (0, j))
    v_spec = pl.BlockSpec((1, tile), lambda j: (0, j))

    cost = pl.CostEstimate(
        flops=5 * batch * f,
        transcendentals=f,                                   # rsqrt per feature
        bytes_accessed=2 * batch * f * x_bytes + 7 * f * 4,
    )

    y, mu_new, s2_new = pl.pallas_call(
        _dropnorm_kernel,
        out_shape=(
            jax.ShapeDtypeStruct((batch, f), out_dtype),     # y in x's dtype
            jax.ShapeDtypeStruct((1, f), jnp.float32),
            jax.ShapeDtypeStruct((1, f), jnp.float32),
        ),
        grid=(n_tiles,),
        in_specs=[x_spec, v_spec, v_spec, v_spec, v_spec, v_spec],
        out_specs=(x_spec, v_spec, v_spec),
        # mu_avg -> mu_out, sigma2_avg -> s2_out updated in place
        input_output_aliases={4: 1, 5: 2},
        compiler_params=pltpu.CompilerParams(
            dimension_semantics=("parallel",),
            vmem_limit_bytes=int(vmem_limit)),
        cost_estimate=cost,
    )(x2, mask2, gamma2, beta2, mu2, s22)

    y = y.reshape(x.shape)
    mu_new = mu_new.reshape(feat_shape)
    s2_new = s2_new.reshape(feat_shape)
    return y, mu_new, s2_new
    # TODO(synk): eval-mode forward (normalize with the running stats) is a
    # trivial elementwise affine and is not kernelized here.


if __name__ == "__main__":
    def run_case(key, batch, in_features, tile_f=None):
        kx, kmask = jax.random.split(key)
        F = 1
        for d in in_features:
            F *= d

        x = jax.random.normal(kx, (batch,) + in_features, dtype=jnp.float32)

        # create_features_mask(): exactly half zeros / half ones, shuffled
        base = jnp.concatenate([jnp.zeros(F // 2, jnp.float32),
                                jnp.ones(F // 2, jnp.float32)])
        mask = (jax.random.permutation(kmask, base).reshape(in_features) == 1.0)

        # deterministic parameter init, as in DropNorm.__init__
        gamma = jnp.ones(in_features, jnp.float32)
        beta = jnp.zeros(in_features, jnp.float32)
        mu_avg = jnp.zeros(in_features, jnp.float32)
        sigma2_avg = jnp.ones(in_features, jnp.float32)

        y, mu_new, s2_new = dropnorm_forward(
            x, mask, gamma, beta, mu_avg, sigma2_avg, tile_f=tile_f)
        jax.block_until_ready((y, mu_new, s2_new))

        # pure-JAX reference
        xm = x.reshape(batch, F)
        m = mask.reshape(F)
        mu = xm.mean(0)
        s2 = xm.var(0, ddof=1)
        xhat = jnp.where(m[None, :],
                         (xm - mu[None, :]) / jnp.sqrt(s2[None, :] + EPSILON), 0.0)
        y_ref = (gamma.reshape(F)[None, :] * xhat
                 + beta.reshape(F)[None, :]).reshape(x.shape)
        mu_ref = jnp.where(m, MU_COEFF * mu_avg.reshape(F) + (1 - MU_COEFF) * mu,
                           mu_avg.reshape(F)).reshape(in_features)
        s2_ref = jnp.where(m, SIGMA2_COEFF * sigma2_avg.reshape(F)
                           + (1 - SIGMA2_COEFF) * s2,
                           sigma2_avg.reshape(F)).reshape(in_features)

        assert y.dtype == x.dtype, "output dtype mismatch"
        assert jnp.allclose(y, y_ref, atol=1e-4, rtol=1e-4), "output mismatch"
        assert jnp.allclose(mu_new, mu_ref, atol=1e-5, rtol=1e-5), "mu_avg mismatch"
        assert jnp.allclose(s2_new, s2_ref, atol=1e-5, rtol=1e-5), "sigma2_avg mismatch"

    key = jax.random.PRNGKey(0)
    k1, k2, k3 = jax.random.split(key, 3)
    # F=64 (< 128): single full-width block, no padding or slicing anywhere.
    run_case(k1, batch=8, in_features=(4, 16))
    # F=384 with a forced 128-wide tile: multi-tile feature grid, even split.
    run_case(k2, batch=8, in_features=(4, 96), tile_f=128)
    # F=160 with a forced 128-wide tile: ragged last tile (32 valid lanes).
    run_case(k3, batch=8, in_features=(4, 40), tile_f=128)

    print("KERNEL_OK")
</pallas_src>

<mosaic_0001>
module attributes {stable_mosaic.version = 11 : i64} {
  func.func @_dropnorm_kernel(%arg0: i32, %arg1: memref<8x64xf32, #tpu.memory_space<vmem>>, %arg2: memref<1x64xf32, #tpu.memory_space<vmem>>, %arg3: memref<1x64xf32, #tpu.memory_space<vmem>>, %arg4: memref<1x64xf32, #tpu.memory_space<vmem>>, %arg5: memref<1x64xf32, #tpu.memory_space<vmem>>, %arg6: memref<1x64xf32, #tpu.memory_space<vmem>>, %arg7: memref<8x64xf32, #tpu.memory_space<vmem>>, %arg8: memref<1x64xf32, #tpu.memory_space<vmem>>, %arg9: memref<1x64xf32, #tpu.memory_space<vmem>>) attributes {dimension_semantics = [#tpu.dimension_semantics<parallel>], iteration_bounds = array<i64: 1>, scalar_prefetch = 0 : i64, scratch_operands = 0 : i64, tpu.core_type = #tpu.core_type<tc>, window_params = [{transform_indices = @transform_0, window_bounds = array<i64: 8, 64>}, {transform_indices = @transform_1, window_bounds = array<i64: 1, 64>}, {transform_indices = @transform_2, window_bounds = array<i64: 1, 64>}, {transform_indices = @transform_3, window_bounds = array<i64: 1, 64>}, {transform_indices = @transform_4, window_bounds = array<i64: 1, 64>}, {transform_indices = @transform_5, window_bounds = array<i64: 1, 64>}, {transform_indices = @transform_6, window_bounds = array<i64: 8, 64>}, {transform_indices = @transform_7, window_bounds = array<i64: 1, 64>}, {transform_indices = @transform_8, window_bounds = array<i64: 1, 64>}]} {
    %c0 = arith.constant 0 : index
    %c0_0 = arith.constant 0 : index
    %0 = vector.load %arg1[%c0, %c0_0] : memref<8x64xf32, #tpu.memory_space<vmem>>, vector<8x64xf32>
    %c0_1 = arith.constant 0 : index
    %c0_2 = arith.constant 0 : index
    %1 = vector.load %arg2[%c0_1, %c0_2] : memref<1x64xf32, #tpu.memory_space<vmem>>, vector<1x64xf32>
    %cst = arith.constant dense<0.000000e+00> : vector<64xf32>
    %2 = vector.multi_reduction <add>, %0, %cst [0] : vector<8x64xf32> to vector<64xf32>
    %3 = vector.shape_cast %2 : vector<64xf32> to vector<1x64xf32>
    %cst_3 = arith.constant 1.250000e-01 : f32
    %4 = vector.broadcast %cst_3 : f32 to vector<1x64xf32>
    %5 = arith.mulf %3, %4 : vector<1x64xf32>
    %6 = vector.broadcast %5 : vector<1x64xf32> to vector<8x64xf32>
    %7 = arith.subf %0, %6 : vector<8x64xf32>
    %8 = arith.mulf %7, %7 : vector<8x64xf32>
    %cst_4 = arith.constant dense<0.000000e+00> : vector<64xf32>
    %9 = vector.multi_reduction <add>, %8, %cst_4 [0] : vector<8x64xf32> to vector<64xf32>
    %10 = vector.shape_cast %9 : vector<64xf32> to vector<1x64xf32>
    %cst_5 = arith.constant 0.142857149 : f32
    %11 = vector.broadcast %cst_5 : f32 to vector<1x64xf32>
    %12 = arith.mulf %10, %11 : vector<1x64xf32>
    %cst_6 = arith.constant 9.99999974E-5 : f32
    %13 = vector.broadcast %cst_6 : f32 to vector<1x64xf32>
    %14 = arith.addf %12, %13 : vector<1x64xf32>
    %15 = math.rsqrt %14 : vector<1x64xf32>
    %c0_7 = arith.constant 0 : index
    %c0_8 = arith.constant 0 : index
    %16 = vector.load %arg3[%c0_7, %c0_8] : memref<1x64xf32, #tpu.memory_space<vmem>>, vector<1x64xf32>
    %17 = arith.mulf %1, %16 : vector<1x64xf32>
    %18 = arith.mulf %17, %15 : vector<1x64xf32>
    %c0_9 = arith.constant 0 : index
    %c0_10 = arith.constant 0 : index
    %19 = vector.load %arg4[%c0_9, %c0_10] : memref<1x64xf32, #tpu.memory_space<vmem>>, vector<1x64xf32>
    %20 = arith.mulf %18, %5 : vector<1x64xf32>
    %21 = arith.subf %19, %20 : vector<1x64xf32>
    %22 = vector.broadcast %18 : vector<1x64xf32> to vector<8x64xf32>
    %23 = arith.mulf %0, %22 : vector<8x64xf32>
    %24 = vector.broadcast %21 : vector<1x64xf32> to vector<8x64xf32>
    %25 = arith.addf %23, %24 : vector<8x64xf32>
    %c0_11 = arith.constant 0 : index
    %c0_12 = arith.constant 0 : index
    %26 = vector.load %arg7[%c0_11, %c0_12] : memref<8x64xf32, #tpu.memory_space<vmem>>, vector<8x64xf32>
    tpu.vector_store %arg7[%c0_11, %c0_12], %25 {strides = array<i32>} : memref<8x64xf32, #tpu.memory_space<vmem>>, vector<8x64xf32>,
    %c0_13 = arith.constant 0 : index
    %c0_14 = arith.constant 0 : index
    %27 = vector.load %arg5[%c0_13, %c0_14] : memref<1x64xf32, #tpu.memory_space<vmem>>, vector<1x64xf32>
    %c0_15 = arith.constant 0 : index
    %c0_16 = arith.constant 0 : index
    %28 = vector.load %arg5[%c0_15, %c0_16] : memref<1x64xf32, #tpu.memory_space<vmem>>, vector<1x64xf32>
    %29 = arith.subf %5, %28 : vector<1x64xf32>
    %cst_17 = arith.constant 1.000000e-01 : f32
    %30 = vector.broadcast %cst_17 : f32 to vector<1x64xf32>
    %31 = arith.mulf %30, %29 : vector<1x64xf32>
    %32 = arith.mulf %1, %31 : vector<1x64xf32>
    %33 = arith.addf %27, %32 : vector<1x64xf32>
    %c0_18 = arith.constant 0 : index
    %c0_19 = arith.constant 0 : index
    %34 = vector.load %arg8[%c0_18, %c0_19] : memref<1x64xf32, #tpu.memory_space<vmem>>, vector<1x64xf32>
    tpu.vector_store %arg8[%c0_18, %c0_19], %33 {strides = array<i32>} : memref<1x64xf32, #tpu.memory_space<vmem>>, vector<1x64xf32>,
    %c0_20 = arith.constant 0 : index
    %c0_21 = arith.constant 0 : index
    %35 = vector.load %arg6[%c0_20, %c0_21] : memref<1x64xf32, #tpu.memory_space<vmem>>, vector<1x64xf32>
    %c0_22 = arith.constant 0 : index
    %c0_23 = arith.constant 0 : index
    %36 = vector.load %arg6[%c0_22, %c0_23] : memref<1x64xf32, #tpu.memory_space<vmem>>, vector<1x64xf32>
    %37 = arith.subf %12, %36 : vector<1x64xf32>
    %cst_24 = arith.constant 1.000000e-01 : f32
    %38 = vector.broadcast %cst_24 : f32 to vector<1x64xf32>
    %39 = arith.mulf %38, %37 : vector<1x64xf32>
    %40 = arith.mulf %1, %39 : vector<1x64xf32>
    %41 = arith.addf %35, %40 : vector<1x64xf32>
    %c0_25 = arith.constant 0 : index
    %c0_26 = arith.constant 0 : index
    %42 = vector.load %arg9[%c0_25, %c0_26] : memref<1x64xf32, #tpu.memory_space<vmem>>, vector<1x64xf32>
    tpu.vector_store %arg9[%c0_25, %c0_26], %41 {strides = array<i32>} : memref<1x64xf32, #tpu.memory_space<vmem>>, vector<1x64xf32>,
    return
  }
  func.func @transform_0(%arg0: i32) -> (i32, i32) {
    %c0_i32 = arith.constant 0 : i32
    %c0_i32_0 = arith.constant 0 : i32
    return %c0_i32, %arg0 : i32, i32
  }
  func.func @transform_1(%arg0: i32) -> (i32, i32) {
    %c0_i32 = arith.constant 0 : i32
    %c0_i32_0 = arith.constant 0 : i32
    return %c0_i32, %arg0 : i32, i32
  }
  func.func @transform_2(%arg0: i32) -> (i32, i32) {
    %c0_i32 = arith.constant 0 : i32
    %c0_i32_0 = arith.constant 0 : i32
    return %c0_i32, %arg0 : i32, i32
  }
  func.func @transform_3(%arg0: i32) -> (i32, i32) {
    %c0_i32 = arith.constant 0 : i32
    %c0_i32_0 = arith.constant 0 : i32
    return %c0_i32, %arg0 : i32, i32
  }
  func.func @transform_4(%arg0: i32) -> (i32, i32) {
    %c0_i32 = arith.constant 0 : i32
    %c0_i32_0 = arith.constant 0 : i32
    return %c0_i32, %arg0 : i32, i32
  }
  func.func @transform_5(%arg0: i32) -> (i32, i32) {
    %c0_i32 = arith.constant 0 : i32
    %c0_i32_0 = arith.constant 0 : i32
    return %c0_i32, %arg0 : i32, i32
  }
  func.func @transform_6(%arg0: i32) -> (i32, i32) {
    %c0_i32 = arith.constant 0 : i32
    %c0_i32_0 = arith.constant 0 : i32
    return %c0_i32, %arg0 : i32, i32
  }
  func.func @transform_7(%arg0: i32) -> (i32, i32) {
    %c0_i32 = arith.constant 0 : i32
    %c0_i32_0 = arith.constant 0 : i32
    return %c0_i32, %arg0 : i32, i32
  }
  func.func @transform_8(%arg0: i32) -> (i32, i32) {
    %c0_i32 = arith.constant 0 : i32
    %c0_i32_0 = arith.constant 0 : i32
    return %c0_i32, %arg0 : i32, i32
  }
}

</mosaic_0001>

<bundles_post_ra>
// kernel: tpu_custom_call.1
= control target key start
LH: loop header
LB: loop body
LE: loop exit
PB: predicated region body
PF: predicated region fallthrough
CT: control target
= control target key end

     0   :  { %14 = vsyncpa [#allocation3], 0  ;;  %s508_s0 = inlined_call_operand.vmem [shape: f32[8,64], index: 0, kind: input, shape index: {}]   ;;  %s509_s1 = inlined_call_operand.hbm [shape: f32[1,64], index: 1, kind: input, shape index: {}]   ;;  %s510_s2 = inlined_call_operand.hbm [shape: f32[1,64], index: 2, kind: input, shape index: {}]   ;;  %s511_s3 = inlined_call_operand.hbm [shape: f32[1,64], index: 3, kind: input, shape index: {}]   ;;  %s512_s4 = inlined_call_operand.hbm [shape: f32[1,64], index: 4, kind: input, shape index: {}, may-alias: {4,7}]   ;;  %s513_s5 = inlined_call_operand.hbm [shape: f32[1,64], index: 5, kind: input, shape index: {}, may-alias: {5,8}]   ;;  %s514_s6 = inlined_call_operand.hbm [shape: f32[8,64], index: 6, kind: output, shape index: {0}]   ;;  %s515_s7 = inlined_call_operand.hbm [shape: f32[1,64], index: 7, kind: output, shape index: {1}, may-alias: {4,7}]   ;;  %s516_s8 = inlined_call_operand.hbm [shape: f32[1,64], index: 8, kind: output, shape index: {2}, may-alias: {5,8}]  }
   0x1   :  { %15 = vsyncpa [#allocation6], 0 }
   0x2   :  { %16 = vsyncpa [#allocation9], 0 }
   0x3   :  { %17 = vsyncpa [#allocation4], 0  ;;  %s37_s29 = sshll.u32 %s510_s2, 4  ;;  %s38_s29 = int_to_ptr.hbm [resolvable:$true] %s37_s29 }
   0x4   :  { %18 = vsyncpa [#allocation13], 0  ;;  %s418_s30 = smov [#allocation5]   ;;  %s59_s12 = sshll.u32 %s512_s4, 4  ;;  %s60_s12 = int_to_ptr.hbm [resolvable:$true] %s59_s12 }
   0x5   :  { %s39_s9 = sshll.u32 %s418_s30, 4  ;;  %s419_s13 = smov [#allocation8]   ;;  %s40_s9 = int_to_ptr.vmem [resolvable:$true] %s39_s9 }
   0x6   :  { %42 = dma.hbm_to_vmem [thread:$0]  %s38_s29, 16, %s40_s9, [#allocation6]  }
   0x7   :  { %s61_s14 = sshll.u32 %s419_s13, 4  ;;  %s26_s17 = sshll.u32 %s509_s1, 4  ;;  %s62_s14 = int_to_ptr.vmem [resolvable:$true] %s61_s14  ;;  %s27_s17 = int_to_ptr.hbm [resolvable:$true] %s26_s17 }
   0x8   :  { %64 = dma.hbm_to_vmem [thread:$0]  %s60_s12, 16, %s62_s14, [#allocation9]  }
   0x9   :  { %s48_s19 = sshll.u32 %s511_s3, 4  ;;  %s420_s20 = smov [#allocation2]   ;;  %s49_s19 = int_to_ptr.hbm [resolvable:$true] %s48_s19 }
   0xa   :  { %s28_s21 = sshll.u32 %s420_s20, 4  ;;  %s421_s4 = smov [#allocation7]   ;;  %s29_s21 = int_to_ptr.vmem [resolvable:$true] %s28_s21 }
   0xb   :  { %31 = dma.hbm_to_vmem [thread:$0]  %s27_s17, 16, %s29_s21, [#allocation3]  }
   0xc   :  { %s50_s22 = sshll.u32 %s421_s4, 4  ;;  %s70_s25 = sshll.u32 %s513_s5, 4  ;;  %s51_s22 = int_to_ptr.vmem [resolvable:$true] %s50_s22  ;;  %s71_s25 = int_to_ptr.hbm [resolvable:$true] %s70_s25 }
   0xd   :  { %53 = dma.hbm_to_vmem [thread:$0]  %s49_s19, 16, %s51_s22, [#allocation6]  }
   0xe   :  { %s422_s1 = smov [#allocation10]  }
   0xf   :  { %s72_s26 = sshll.u32 %s422_s1, 4  ;;  %s73_s26 = int_to_ptr.vmem [resolvable:$true] %s72_s26 }
  0x10   :  { %75 = dma.hbm_to_vmem [thread:$0]  %s71_s25, 16, %s73_s26, [#allocation9]  }
  0x11   :  { %408 = dma.done.wait [#allocation3], 16  }
  0x12   :  { %409 = vsyncadd [#allocation3], 4294967280 }
  0x13   :  { %410 = dma.done.wait [#allocation6], 32  }
  0x14   :  { %411 = vsyncadd [#allocation6], 4294967264 }
  0x15   :  { %412 = dma.done.wait [#allocation9], 32  }
  0x16   :  { %413 = vsyncadd [#allocation9], 4294967264  ;;  %vm98_vm0 = vcmask 523264   ;;  %v489_v0 = vld [vmem:[%s508_s0] sm:$0xff]  ;;  %v143_v8 = vld [vmem:[#allocation8] sm:$0x1] }
  0x17   :  { %v99_v1 = vsel %vm98_vm0, %v489_v0, 0.0  ;;  %v97_v14 = vld [vmem:[#allocation2] sm:$0x1]  ;;  %s423_s5 = smov [#allocation12]   ;;  %s174_s30 = sshll.u32 %s515_s7, 4  ;;  %vm148_vm1 = vcmask 516096   ;;  %s175_s30 = int_to_ptr.hbm [resolvable:$true] %s174_s30 }
  0x18   :  { %v100_v2 = vrot.slane %v99_v1, 4  ;;  %s172_s0 = sshll.u32 %s423_s5, 4  ;;  %v150_v24 = vld [vmem:[#allocation10] sm:$0x1]  ;;  %s424_s7 = smov [#allocation14]   ;;  %s173_s0 = int_to_ptr.vmem [resolvable:$true] %s172_s0 }
  0x19   :  { %s183_s9 = sshll.u32 %s424_s7, 4  ;;  %s185_s12 = sshll.u32 %s516_s8, 4  ;;  %v128_v34 = vld [vmem:[#allocation5] sm:$0x1]  ;;  %v131_v41 = vld [vmem:[#allocation7] sm:$0x1]  ;;  %s184_s9 = int_to_ptr.vmem [resolvable:$true] %s183_s9  ;;  %s186_s12 = int_to_ptr.hbm [resolvable:$true] %s185_s12 }
  0x1a   :  { %v101_v3 = vadd.f32 %v100_v2, %v99_v1  ;;  %v129_v37 = vmul.f32 %v128_v34, %v97_v14  ;;  %s425_s8 = smov [#allocation11]   ;;  %s163_s16 = sshll.u32 %s514_s6, 4  ;;  %s164_s16 = int_to_ptr.hbm [resolvable:$true] %s163_s16 }
  0x1b   :  { %s161_s13 = sshll.u32 %s425_s8, 4  ;;  %s162_s13 = int_to_ptr.vmem [resolvable:$true] %s161_s13 }
  0x1c   :  { %v102_v4 = vrot.slane %v101_v3, 2 }
  0x1e   :  { %v103_v5 = vadd.f32 %v102_v4, %v101_v3 }
  0x20   :  { %v104_v6 = vrot.slane %v103_v5, 1 }
  0x22   :  { %v105_v7 = vadd.f32 %v104_v6, %v103_v5 }
  0x24   :  { %v106_v9 = vmul.f32 0.125, %v105_v7 }
  0x26   :  { %v107_v10 = vsub.f32 %v489_v0, %v106_v9  ;;  %v144_v11 = vsub.f32 %v106_v9, %v143_v8 }
  0x28   :  { %v108_v12 = vmul.f32 %v107_v10, %v107_v10  ;;  %v145_v13 = vmul.f32 0.1, %v144_v11 }
  0x2a   :  { %v109_v15 = vsel %vm98_vm0, %v108_v12, 0.0  ;;  %v146_v16 = vmul.f32 %v145_v13, %v97_v14 }
  0x2b   :  { %v110_v17 = vrot.slane %v109_v15, 4 }
  0x2c   :  { %v147_v18 = vadd.f32 %v146_v16, %v143_v8 }
  0x2d   :  { %v111_v19 = vadd.f32 %v110_v17, %v109_v15 }
  0x2e   :  { %149 = vst.msk [vmem:[#allocation12] sm:$0x1] %vm148_vm1, %v147_v18 }
  0x2f   :  { %v112_v20 = vrot.slane %v111_v19, 2  ;;  %177 = dma.vmem_to_hbm [thread:$0]  %s173_s0, 16, %s175_s30, [#allocation13]  }
  0x31   :  { %v113_v21 = vadd.f32 %v112_v20, %v111_v19 }
  0x33   :  { %v114_v22 = vrot.slane %v113_v21, 1 }
  0x35   :  { %v115_v23 = vadd.f32 %v114_v22, %v113_v21 }
  0x37   :  { %v116_v25 = vmul.f32 0.14285715, %v115_v23 }
  0x39   :  { %v117_v26 = vadd.f32 0.0001, %v116_v25  ;;  %v151_v27 = vsub.f32 %v116_v25, %v150_v24 }
  0x3b   :  { %214 = vrsqrt.f32 %v117_v26  ;;  %v152_v28 = vmul.f32 0.1, %v151_v27  ;;  %vm124_vm2 = vweird.f32 %v117_v26 }
  0x3d   :  { %v153_v29 = vmul.f32 %v152_v28, %v97_v14 }
  0x3f   :  { %v154_v30 = vadd.f32 %v153_v29, %v150_v24 }
  0x41   :  { %v215_v31 = vpop.eup %214  ;;  %155 = vst.msk [vmem:[#allocation14] sm:$0x1] %vm148_vm1, %v154_v30 }
  0x42   :  { %v119_v32 = vmul.f32 %v215_v31, %v117_v26  ;;  %188 = dma.vmem_to_hbm [thread:$0]  %s184_s9, 16, %s186_s12, [#allocation13]   ;;  %vm125_vm3 = vweird.f32 %v215_v31 }
  0x43   :  { %vm126_vm4 = vmor %vm124_vm2, %vm125_vm3 }
  0x44   :  { %v120_v33 = vmul.f32 %v215_v31, %v119_v32 }
  0x46   :  { %v121_v35 = vmul.f32 0.5, %v120_v33 }
  0x48   :  { %v122_v36 = vsub.f32 1.5, %v121_v35 }
  0x4a   :  { %v123_v38 = vmul.f32 %v215_v31, %v122_v36 }
  0x4c   :  { %v127_v39 = vsel %vm126_vm4, %v215_v31, %v123_v38 }
  0x4d   :  { %v130_v40 = vmul.f32 %v129_v37, %v127_v39 }
  0x4f   :  { %v132_v42 = vmul.f32 %v130_v40, %v106_v9  ;;  %v135_v43 = vperm.slane %v130_v40, 0 }
  0x51   :  { %v133_v44 = vsub.f32 %v131_v41, %v132_v42  ;;  %v137_v45 = vmul.f32 %v135_v43, %v489_v0 }
  0x53   :  { %v139_v46 = vperm.slane %v133_v44, 0 }
  0x55   :  { %v141_v47 = vadd.f32 %v139_v46, %v137_v45 }
  0x57   :  { %142 = vst.msk [vmem:[#allocation11] sm:$0xff] %vm98_vm0, %v141_v47 }
  0x58   :  { %166 = dma.vmem_to_hbm [thread:$0]  %s162_s13, 128, %s164_s16, [#allocation4]  }
  0x59   :  { %414 = dma.done.wait [#allocation4], 128  }
  0x5a   :  { %415 = vsyncadd [#allocation4], 4294967168 }
  0x5b   :  { %416 = dma.done.wait [#allocation13], 32  }
  0x5c   :  { %417 = vsyncadd [#allocation13], 4294967264 }
  0x5d   :  { %201 = vsyncpa [#allocation3], 1 }
  0x5e   :  { %202 = vsyncpa [#allocation6], 1 }
  0x5f   :  { %203 = vsyncpa [#allocation9], 1 }
  0x60   :  { %204 = vsyncpa [#allocation4], 1 }
  0x61   :  { %205 = vsyncpa [#allocation13], 1 }

</bundles_post_ra>
